<compile_context>
chip_gen: v5e
topology: v5e:2x2
jax: 0.10.0
libtpu: 0.0.40
codegen_flags: <defaults>
</compile_context>

<pallas_src>
import jax
import jax.numpy as jnp
from jax import lax
from jax.experimental import pallas as pl
from jax.experimental.pallas import tpu as pltpu  # noqa: F401  (TPU backend)

LANE = 128
SUBLANE = 8


def _round_up(x, m):
    return (x + m - 1) // m * m


def _pad2d(a, rows, cols):
    r, c = a.shape
    return jnp.zeros((rows, cols), a.dtype).at[:r, :c].set(a)


# ---------------------------------------------------------------------------
# Fused forward kernel
# ---------------------------------------------------------------------------

def _make_fused_kernel(num_types, row_offs, row_cnts, num_layers, r_half,
                       relu_flags, d_out, d_pad):
    """Build the fused kernel. All structural metadata is static (closure)."""

    def kernel(*refs):
        xs = refs[0:num_types]                        # per-type inputs (n_t_pad, d_t_pad)
        wls = refs[num_types:2 * num_types]           # per-type (d_t_pad, Dp)  (pre-transposed)
        bls = refs[2 * num_types:3 * num_types]       # per-type (1, Dp)
        i = 3 * num_types
        a_ref = refs[i + 0]                           # (r_half, Np, Np)  normalized adjacency
        wcat_ref = refs[i + 1]                        # (L, Dp, (1+r_half)*Dp) = [W_root | W_r...]
        brg_ref = refs[i + 2]                         # (L, 1, Dp)
        gamma_ref = refs[i + 3]                       # (1, Dp)
        beta_ref = refs[i + 4]                        # (1, Dp)
        o_ref = refs[i + 5]                           # (Np, Dp) output; staging buffer for x

        # --- trans_dimensions: per-type linear projection, stacked along rows.
        for t in range(num_types):
            y = jnp.dot(xs[t][...], wls[t][...],
                        preferred_element_type=jnp.float32) + bls[t][...]
            o_ref[pl.ds(row_offs[t], row_cnts[t]), :] = y

        # x stays a value from here on (no VMEM round-trips between layers).
        x = o_ref[...]                                # (Np, Dp)

        # --- 3 RGCN layers; relation loop fully inside the body (no grid axis).
        for layer in range(num_layers):
            # Single wide matmul: [x @ W_root | x @ W_r0 | x @ W_r1 | ...]
            h = jnp.dot(x, wcat_ref[layer], preferred_element_type=jnp.float32)
            out = h[:, 0:d_pad] + brg_ref[layer]
            for r in range(r_half):                   # r_half tiny & static -> unrolled
                out = out + jnp.dot(
                    a_ref[r], h[:, (r + 1) * d_pad:(r + 2) * d_pad],
                    preferred_element_type=jnp.float32)
            if relu_flags[layer]:
                out = jnp.maximum(out, 0.0)
            # TODO(synk): F.dropout(p=0.1/0.2, training=True) omitted — eval-mode identity.
            x = out

        # --- LayerNorm epilogue, masked to the first d_out (real) lanes.
        lane = lax.broadcasted_iota(jnp.int32, x.shape, 1)
        mask = (lane < d_out).astype(jnp.float32)
        mu = jnp.sum(x, axis=-1, keepdims=True) * (1.0 / d_out)   # padded lanes are zero
        xc = (x - mu) * mask
        var = jnp.sum(xc * xc, axis=-1, keepdims=True) * (1.0 / d_out)
        inv = lax.rsqrt(var + 1e-5)
        o_ref[...] = xc * inv * gamma_ref[...] + beta_ref[...]    # padded gamma/beta are zero

    return kernel


# ---------------------------------------------------------------------------
# Model wrapper (param padding / dense adjacency build / single fused call)
# ---------------------------------------------------------------------------

def rgcn_lp_forward(params, init_x, edge_index, edge_type, num_relations,
                    out_channels):
    f32 = jnp.float32
    num_types = len(init_x)
    r_half = num_relations // 2
    num_layers = 3

    counts = [int(x.shape[0]) for x in init_x]
    pad_counts = [_round_up(c, SUBLANE) for c in counts]
    offs_pad = [0]
    for c in pad_counts[:-1]:
        offs_pad.append(offs_pad[-1] + c)
    n_pad = sum(pad_counts)

    # Map original global node ids (concatenation order) -> padded node ids.
    remap = jnp.concatenate(
        [jnp.arange(c, dtype=jnp.int32) + off for c, off in zip(counts, offs_pad)])

    d_pad = LANE  # all channel widths (in/lat/hid/out) padded to one lane-dense width

    # Per-type inputs & pre-transposed, zero-padded linear weights.
    xs_p, wl_p, bl_p = [], [], []
    for x, (w, b) in zip(init_x, params["lins"]):
        n_t, d_t = x.shape
        n_t_pad = _round_up(n_t, SUBLANE)
        d_t_pad = _round_up(d_t, LANE)
        xs_p.append(_pad2d(x.astype(f32), n_t_pad, d_t_pad))
        wl_p.append(_pad2d(w.T.astype(f32), d_t_pad, d_pad))       # (in, out)
        bl_p.append(_pad2d(b.astype(f32).reshape(1, -1), 1, d_pad))

    # Dense normalized adjacency per (halved) relation over padded node ids:
    # mean aggregation, messages flow source -> target (A[r, dst, src]).
    src = remap[edge_index[0]]
    dst = remap[edge_index[1]]
    rel = edge_type // 2
    a = jnp.zeros((r_half, n_pad, n_pad), f32)
    a = a.at[rel, dst, src].add(1.0)
    deg = a.sum(axis=2, keepdims=True)
    a = a / jnp.maximum(deg, 1.0)

    # Basis-combined RGCN weights, packed as one wide [W_root | W_r0 | ...] per layer.
    wcat_l, brg_l = [], []
    for name in ("conv1", "conv2", "conv3"):
        comp, basis, w_root, bias = params[name]
        w_rel = jnp.einsum("rb,bio->rio", comp, basis)             # (r_half, din, dout)
        blocks = [_pad2d(w_root.astype(f32), d_pad, d_pad)]
        blocks += [_pad2d(w_rel[r].astype(f32), d_pad, d_pad) for r in range(r_half)]
        wcat_l.append(jnp.concatenate(blocks, axis=1))             # (Dp, (1+r_half)*Dp)
        brg_l.append(_pad2d(bias.astype(f32).reshape(1, -1), 1, d_pad))
    wcat = jnp.stack(wcat_l)                                       # (L, Dp, (1+r_half)*Dp)
    brg = jnp.stack(brg_l)                                         # (L, 1, Dp)

    gamma, beta = params["norm"]
    gamma_p = _pad2d(gamma.astype(f32).reshape(1, -1), 1, d_pad)
    beta_p = _pad2d(beta.astype(f32).reshape(1, -1), 1, d_pad)

    kernel = _make_fused_kernel(num_types, tuple(offs_pad), tuple(pad_counts),
                                num_layers, r_half, (True, True, False),
                                out_channels, d_pad)

    # Single fused pallas_call: no grid, all operands resident whole in VMEM.
    out_pad = pl.pallas_call(
        kernel,
        out_shape=jax.ShapeDtypeStruct((n_pad, d_pad), f32),
    )(*xs_p, *wl_p, *bl_p, a, wcat, brg, gamma_p, beta_p)

    # Strip node/lane padding back to the logical (num_nodes, out_channels) output.
    return out_pad[remap][:, :out_channels]


# ---------------------------------------------------------------------------
# Deterministic example run
# ---------------------------------------------------------------------------

if __name__ == "__main__":
    key = jax.random.PRNGKey(0)
    keys = jax.random.split(key, 12)

    in_c, lat_c, hid_c, out_c = 32, 32, 32, 32
    num_relations = 4
    r_half = num_relations // 2          # RGCNConv uses num_relations // 2
    init_sizes = [16, 24]
    node_counts = [8, 8]
    num_nodes = sum(node_counts)
    num_edges = 40

    # heterogeneous input node features (different feature widths per type)
    init_x = [
        jax.random.normal(keys[0], (node_counts[0], init_sizes[0]), jnp.float32),
        jax.random.normal(keys[1], (node_counts[1], init_sizes[1]), jnp.float32),
    ]
    src = jax.random.randint(keys[2], (num_edges,), 0, num_nodes)
    dst = jax.random.randint(keys[3], (num_edges,), 0, num_nodes)
    edge_index = jnp.stack([src, dst])                       # (2, E)
    edge_type = jax.random.randint(keys[4], (num_edges,), 0, num_relations)

    def init_lin(k, din, dout):
        kw, kb = jax.random.split(k)
        return (0.1 * jax.random.normal(kw, (dout, din), jnp.float32),
                0.1 * jax.random.normal(kb, (dout,), jnp.float32))

    def init_rgcn(k, din, dout, nrel):
        k1, k2, k3, k4 = jax.random.split(k, 4)
        comp = 0.1 * jax.random.normal(k1, (nrel, nrel), jnp.float32)       # num_bases == nrel
        basis = 0.1 * jax.random.normal(k2, (nrel, din, dout), jnp.float32)
        w_root = 0.1 * jax.random.normal(k3, (din, dout), jnp.float32)
        bias = 0.1 * jax.random.normal(k4, (dout,), jnp.float32)
        return comp, basis, w_root, bias

    params = {
        "lins": [init_lin(keys[5], init_sizes[0], in_c),
                 init_lin(keys[6], init_sizes[1], in_c)],
        "conv1": init_rgcn(keys[7], in_c, lat_c, r_half),
        "conv2": init_rgcn(keys[8], lat_c, hid_c, r_half),
        "conv3": init_rgcn(keys[9], hid_c, out_c, r_half),
        "norm": (jnp.ones((out_c,), jnp.float32),            # LayerNorm default init
                 jnp.zeros((out_c,), jnp.float32)),
    }

    out = rgcn_lp_forward(params, init_x, edge_index, edge_type,
                          num_relations, out_c)
    out = jax.block_until_ready(out)
    assert out.shape == (num_nodes, out_c), out.shape
    assert jnp.all(jnp.isfinite(out))
    print("KERNEL_OK")
</pallas_src>

<mosaic_0001>
module attributes {stable_mosaic.version = 11 : i64} {
  func.func @kernel(%arg0: memref<8x128xf32, #tpu.memory_space<vmem>>, %arg1: memref<8x128xf32, #tpu.memory_space<vmem>>, %arg2: memref<128x128xf32, #tpu.memory_space<vmem>>, %arg3: memref<128x128xf32, #tpu.memory_space<vmem>>, %arg4: memref<1x128xf32, #tpu.memory_space<vmem>>, %arg5: memref<1x128xf32, #tpu.memory_space<vmem>>, %arg6: memref<2x16x16xf32, #tpu.memory_space<vmem>>, %arg7: memref<3x128x384xf32, #tpu.memory_space<vmem>>, %arg8: memref<3x1x128xf32, #tpu.memory_space<vmem>>, %arg9: memref<1x128xf32, #tpu.memory_space<vmem>>, %arg10: memref<1x128xf32, #tpu.memory_space<vmem>>, %arg11: memref<16x128xf32, #tpu.memory_space<vmem>>) attributes {dimension_semantics = [], scalar_prefetch = 0 : i64, scratch_operands = 0 : i64, tpu.core_type = #tpu.core_type<tc>} {
    %c0 = arith.constant 0 : index
    %c0_0 = arith.constant 0 : index
    %0 = vector.load %arg0[%c0, %c0_0] : memref<8x128xf32, #tpu.memory_space<vmem>>, vector<8x128xf32>
    %c0_1 = arith.constant 0 : index
    %c0_2 = arith.constant 0 : index
    %1 = vector.load %arg2[%c0_1, %c0_2] : memref<128x128xf32, #tpu.memory_space<vmem>>, vector<128x128xf32>
    %cst = arith.constant dense<0.000000e+00> : vector<8x128xf32>
    %2 = tpu.matmul %0, %1, %cst {dimension_numbers = #tpu.dot_dimension_numbers<[1], [0], [0], [1], [0, 0, 1, 1], [], []>} : vector<8x128xf32>, vector<128x128xf32>, vector<8x128xf32> -> vector<8x128xf32>
    %c0_3 = arith.constant 0 : index
    %c0_4 = arith.constant 0 : index
    %3 = vector.load %arg4[%c0_3, %c0_4] : memref<1x128xf32, #tpu.memory_space<vmem>>, vector<1x128xf32>
    %4 = vector.broadcast %3 : vector<1x128xf32> to vector<8x128xf32>
    %5 = arith.addf %2, %4 : vector<8x128xf32>
    %c0_5 = arith.constant 0 : index
    %c0_6 = arith.constant 0 : index
    %6 = vector.load %arg11[%c0_5, %c0_6] : memref<16x128xf32, #tpu.memory_space<vmem>>, vector<8x128xf32>
    tpu.vector_store %arg11[%c0_5, %c0_6], %5 {strides = array<i32>} : memref<16x128xf32, #tpu.memory_space<vmem>>, vector<8x128xf32>,
    %c0_7 = arith.constant 0 : index
    %c0_8 = arith.constant 0 : index
    %7 = vector.load %arg1[%c0_7, %c0_8] : memref<8x128xf32, #tpu.memory_space<vmem>>, vector<8x128xf32>
    %c0_9 = arith.constant 0 : index
    %c0_10 = arith.constant 0 : index
    %8 = vector.load %arg3[%c0_9, %c0_10] : memref<128x128xf32, #tpu.memory_space<vmem>>, vector<128x128xf32>
    %cst_11 = arith.constant dense<0.000000e+00> : vector<8x128xf32>
    %9 = tpu.matmul %7, %8, %cst_11 {dimension_numbers = #tpu.dot_dimension_numbers<[1], [0], [0], [1], [0, 0, 1, 1], [], []>} : vector<8x128xf32>, vector<128x128xf32>, vector<8x128xf32> -> vector<8x128xf32>
    %c0_12 = arith.constant 0 : index
    %c0_13 = arith.constant 0 : index
    %10 = vector.load %arg5[%c0_12, %c0_13] : memref<1x128xf32, #tpu.memory_space<vmem>>, vector<1x128xf32>
    %11 = vector.broadcast %10 : vector<1x128xf32> to vector<8x128xf32>
    %12 = arith.addf %9, %11 : vector<8x128xf32>
    %c8 = arith.constant 8 : index
    %c0_14 = arith.constant 0 : index
    %13 = vector.load %arg11[%c8, %c0_14] : memref<16x128xf32, #tpu.memory_space<vmem>>, vector<8x128xf32>
    tpu.vector_store %arg11[%c8, %c0_14], %12 {strides = array<i32>} : memref<16x128xf32, #tpu.memory_space<vmem>>, vector<8x128xf32>,
    %c0_15 = arith.constant 0 : index
    %c0_16 = arith.constant 0 : index
    %14 = vector.load %arg11[%c0_15, %c0_16] : memref<16x128xf32, #tpu.memory_space<vmem>>, vector<16x128xf32>
    %c0_17 = arith.constant 0 : index
    %c0_18 = arith.constant 0 : index
    %c0_19 = arith.constant 0 : index
    %15 = vector.load %arg7[%c0_17, %c0_18, %c0_19] : memref<3x128x384xf32, #tpu.memory_space<vmem>>, vector<1x128x384xf32>
    %16 = vector.shape_cast %15 : vector<1x128x384xf32> to vector<128x384xf32>
    %cst_20 = arith.constant dense<0.000000e+00> : vector<16x384xf32>
    %17 = tpu.matmul %14, %16, %cst_20 {dimension_numbers = #tpu.dot_dimension_numbers<[1], [0], [0], [1], [0, 0, 1, 1], [], []>} : vector<16x128xf32>, vector<128x384xf32>, vector<16x384xf32> -> vector<16x384xf32>
    %18 = vector.extract_strided_slice %17 {offsets = [0, 0], sizes = [16, 128], strides = [1, 1]} : vector<16x384xf32> to vector<16x128xf32>
    %c0_21 = arith.constant 0 : index
    %c0_22 = arith.constant 0 : index
    %c0_23 = arith.constant 0 : index
    %19 = vector.load %arg8[%c0_21, %c0_22, %c0_23] : memref<3x1x128xf32, #tpu.memory_space<vmem>>, vector<1x1x128xf32>
    %20 = vector.shape_cast %19 : vector<1x1x128xf32> to vector<1x128xf32>
    %21 = vector.broadcast %20 : vector<1x128xf32> to vector<16x128xf32>
    %22 = arith.addf %18, %21 : vector<16x128xf32>
    %c0_24 = arith.constant 0 : index
    %c0_25 = arith.constant 0 : index
    %c0_26 = arith.constant 0 : index
    %23 = vector.load %arg6[%c0_24, %c0_25, %c0_26] : memref<2x16x16xf32, #tpu.memory_space<vmem>>, vector<1x16x16xf32>
    %24 = vector.shape_cast %23 : vector<1x16x16xf32> to vector<16x16xf32>
    %25 = vector.extract_strided_slice %17 {offsets = [0, 128], sizes = [16, 128], strides = [1, 1]} : vector<16x384xf32> to vector<16x128xf32>
    %cst_27 = arith.constant dense<0.000000e+00> : vector<16x128xf32>
    %26 = tpu.matmul %24, %25, %cst_27 {dimension_numbers = #tpu.dot_dimension_numbers<[1], [0], [0], [1], [0, 0, 1, 1], [], []>} : vector<16x16xf32>, vector<16x128xf32>, vector<16x128xf32> -> vector<16x128xf32>
    %27 = arith.addf %22, %26 : vector<16x128xf32>
    %c1 = arith.constant 1 : index
    %c0_28 = arith.constant 0 : index
    %c0_29 = arith.constant 0 : index
    %28 = vector.load %arg6[%c1, %c0_28, %c0_29] : memref<2x16x16xf32, #tpu.memory_space<vmem>>, vector<1x16x16xf32>
    %29 = vector.shape_cast %28 : vector<1x16x16xf32> to vector<16x16xf32>
    %30 = vector.extract_strided_slice %17 {offsets = [0, 256], sizes = [16, 128], strides = [1, 1]} : vector<16x384xf32> to vector<16x128xf32>
    %cst_30 = arith.constant dense<0.000000e+00> : vector<16x128xf32>
    %31 = tpu.matmul %29, %30, %cst_30 {dimension_numbers = #tpu.dot_dimension_numbers<[1], [0], [0], [1], [0, 0, 1, 1], [], []>} : vector<16x16xf32>, vector<16x128xf32>, vector<16x128xf32> -> vector<16x128xf32>
    %32 = arith.addf %27, %31 : vector<16x128xf32>
    %cst_31 = arith.constant 0.000000e+00 : f32
    %33 = vector.broadcast %cst_31 : f32 to vector<16x128xf32>
    %34 = arith.maximumf %32, %33 : vector<16x128xf32>
    %c1_32 = arith.constant 1 : index
    %c0_33 = arith.constant 0 : index
    %c0_34 = arith.constant 0 : index
    %35 = vector.load %arg7[%c1_32, %c0_33, %c0_34] : memref<3x128x384xf32, #tpu.memory_space<vmem>>, vector<1x128x384xf32>
    %36 = vector.shape_cast %35 : vector<1x128x384xf32> to vector<128x384xf32>
    %cst_35 = arith.constant dense<0.000000e+00> : vector<16x384xf32>
    %37 = tpu.matmul %34, %36, %cst_35 {dimension_numbers = #tpu.dot_dimension_numbers<[1], [0], [0], [1], [0, 0, 1, 1], [], []>} : vector<16x128xf32>, vector<128x384xf32>, vector<16x384xf32> -> vector<16x384xf32>
    %38 = vector.extract_strided_slice %37 {offsets = [0, 0], sizes = [16, 128], strides = [1, 1]} : vector<16x384xf32> to vector<16x128xf32>
    %c1_36 = arith.constant 1 : index
    %c0_37 = arith.constant 0 : index
    %c0_38 = arith.constant 0 : index
    %39 = vector.load %arg8[%c1_36, %c0_37, %c0_38] : memref<3x1x128xf32, #tpu.memory_space<vmem>>, vector<1x1x128xf32>
    %40 = vector.shape_cast %39 : vector<1x1x128xf32> to vector<1x128xf32>
    %41 = vector.broadcast %40 : vector<1x128xf32> to vector<16x128xf32>
    %42 = arith.addf %38, %41 : vector<16x128xf32>
    %c0_39 = arith.constant 0 : index
    %c0_40 = arith.constant 0 : index
    %c0_41 = arith.constant 0 : index
    %43 = vector.load %arg6[%c0_39, %c0_40, %c0_41] : memref<2x16x16xf32, #tpu.memory_space<vmem>>, vector<1x16x16xf32>
    %44 = vector.shape_cast %43 : vector<1x16x16xf32> to vector<16x16xf32>
    %45 = vector.extract_strided_slice %37 {offsets = [0, 128], sizes = [16, 128], strides = [1, 1]} : vector<16x384xf32> to vector<16x128xf32>
    %cst_42 = arith.constant dense<0.000000e+00> : vector<16x128xf32>
    %46 = tpu.matmul %44, %45, %cst_42 {dimension_numbers = #tpu.dot_dimension_numbers<[1], [0], [0], [1], [0, 0, 1, 1], [], []>} : vector<16x16xf32>, vector<16x128xf32>, vector<16x128xf32> -> vector<16x128xf32>
    %47 = arith.addf %42, %46 : vector<16x128xf32>
    %c1_43 = arith.constant 1 : index
    %c0_44 = arith.constant 0 : index
    %c0_45 = arith.constant 0 : index
    %48 = vector.load %arg6[%c1_43, %c0_44, %c0_45] : memref<2x16x16xf32, #tpu.memory_space<vmem>>, vector<1x16x16xf32>
    %49 = vector.shape_cast %48 : vector<1x16x16xf32> to vector<16x16xf32>
    %50 = vector.extract_strided_slice %37 {offsets = [0, 256], sizes = [16, 128], strides = [1, 1]} : vector<16x384xf32> to vector<16x128xf32>
    %cst_46 = arith.constant dense<0.000000e+00> : vector<16x128xf32>
    %51 = tpu.matmul %49, %50, %cst_46 {dimension_numbers = #tpu.dot_dimension_numbers<[1], [0], [0], [1], [0, 0, 1, 1], [], []>} : vector<16x16xf32>, vector<16x128xf32>, vector<16x128xf32> -> vector<16x128xf32>
    %52 = arith.addf %47, %51 : vector<16x128xf32>
    %cst_47 = arith.constant 0.000000e+00 : f32
    %53 = vector.broadcast %cst_47 : f32 to vector<16x128xf32>
    %54 = arith.maximumf %52, %53 : vector<16x128xf32>
    %c2 = arith.constant 2 : index
    %c0_48 = arith.constant 0 : index
    %c0_49 = arith.constant 0 : index
    %55 = vector.load %arg7[%c2, %c0_48, %c0_49] : memref<3x128x384xf32, #tpu.memory_space<vmem>>, vector<1x128x384xf32>
    %56 = vector.shape_cast %55 : vector<1x128x384xf32> to vector<128x384xf32>
    %cst_50 = arith.constant dense<0.000000e+00> : vector<16x384xf32>
    %57 = tpu.matmul %54, %56, %cst_50 {dimension_numbers = #tpu.dot_dimension_numbers<[1], [0], [0], [1], [0, 0, 1, 1], [], []>} : vector<16x128xf32>, vector<128x384xf32>, vector<16x384xf32> -> vector<16x384xf32>
    %58 = vector.extract_strided_slice %57 {offsets = [0, 0], sizes = [16, 128], strides = [1, 1]} : vector<16x384xf32> to vector<16x128xf32>
    %c2_51 = arith.constant 2 : index
    %c0_52 = arith.constant 0 : index
    %c0_53 = arith.constant 0 : index
    %59 = vector.load %arg8[%c2_51, %c0_52, %c0_53] : memref<3x1x128xf32, #tpu.memory_space<vmem>>, vector<1x1x128xf32>
    %60 = vector.shape_cast %59 : vector<1x1x128xf32> to vector<1x128xf32>
    %61 = vector.broadcast %60 : vector<1x128xf32> to vector<16x128xf32>
    %62 = arith.addf %58, %61 : vector<16x128xf32>
    %c0_54 = arith.constant 0 : index
    %c0_55 = arith.constant 0 : index
    %c0_56 = arith.constant 0 : index
    %63 = vector.load %arg6[%c0_54, %c0_55, %c0_56] : memref<2x16x16xf32, #tpu.memory_space<vmem>>, vector<1x16x16xf32>
    %64 = vector.shape_cast %63 : vector<1x16x16xf32> to vector<16x16xf32>
    %65 = vector.extract_strided_slice %57 {offsets = [0, 128], sizes = [16, 128], strides = [1, 1]} : vector<16x384xf32> to vector<16x128xf32>
    %cst_57 = arith.constant dense<0.000000e+00> : vector<16x128xf32>
    %66 = tpu.matmul %64, %65, %cst_57 {dimension_numbers = #tpu.dot_dimension_numbers<[1], [0], [0], [1], [0, 0, 1, 1], [], []>} : vector<16x16xf32>, vector<16x128xf32>, vector<16x128xf32> -> vector<16x128xf32>
    %67 = arith.addf %62, %66 : vector<16x128xf32>
    %c1_58 = arith.constant 1 : index
    %c0_59 = arith.constant 0 : index
    %c0_60 = arith.constant 0 : index
    %68 = vector.load %arg6[%c1_58, %c0_59, %c0_60] : memref<2x16x16xf32, #tpu.memory_space<vmem>>, vector<1x16x16xf32>
    %69 = vector.shape_cast %68 : vector<1x16x16xf32> to vector<16x16xf32>
    %70 = vector.extract_strided_slice %57 {offsets = [0, 256], sizes = [16, 128], strides = [1, 1]} : vector<16x384xf32> to vector<16x128xf32>
    %cst_61 = arith.constant dense<0.000000e+00> : vector<16x128xf32>
    %71 = tpu.matmul %69, %70, %cst_61 {dimension_numbers = #tpu.dot_dimension_numbers<[1], [0], [0], [1], [0, 0, 1, 1], [], []>} : vector<16x16xf32>, vector<16x128xf32>, vector<16x128xf32> -> vector<16x128xf32>
    %72 = arith.addf %67, %71 : vector<16x128xf32>
    %73 = tpu.iota {dimensions = array<i32: 1>} : vector<16x128xi32>
    %c32_i32 = arith.constant 32 : i32
    %74 = vector.broadcast %c32_i32 : i32 to vector<16x128xi32>
    %75 = arith.cmpi slt, %73, %74 : vector<16x128xi32>
    %76 = arith.extui %75 : vector<16x128xi1> to vector<16x128xi32>
    %77 = arith.sitofp %76 : vector<16x128xi32> to vector<16x128xf32>
    %cst_62 = arith.constant dense<0.000000e+00> : vector<16xf32>
    %78 = vector.multi_reduction <add>, %72, %cst_62 [1] : vector<16x128xf32> to vector<16xf32>
    %79 = vector.shape_cast %78 : vector<16xf32> to vector<16x1xf32>
    %cst_63 = arith.constant 3.125000e-02 : f32
    %80 = vector.broadcast %cst_63 : f32 to vector<16x1xf32>
    %81 = arith.mulf %79, %80 : vector<16x1xf32>
    %82 = vector.broadcast %81 : vector<16x1xf32> to vector<16x128xf32>
    %83 = arith.subf %72, %82 : vector<16x128xf32>
    %84 = arith.mulf %83, %77 : vector<16x128xf32>
    %85 = arith.mulf %84, %84 : vector<16x128xf32>
    %cst_64 = arith.constant dense<0.000000e+00> : vector<16xf32>
    %86 = vector.multi_reduction <add>, %85, %cst_64 [1] : vector<16x128xf32> to vector<16xf32>
    %87 = vector.shape_cast %86 : vector<16xf32> to vector<16x1xf32>
    %cst_65 = arith.constant 3.125000e-02 : f32
    %88 = vector.broadcast %cst_65 : f32 to vector<16x1xf32>
    %89 = arith.mulf %87, %88 : vector<16x1xf32>
    %cst_66 = arith.constant 9.99999974E-6 : f32
    %90 = vector.broadcast %cst_66 : f32 to vector<16x1xf32>
    %91 = arith.addf %89, %90 : vector<16x1xf32>
    %92 = math.rsqrt %91 : vector<16x1xf32>
    %93 = vector.broadcast %92 : vector<16x1xf32> to vector<16x128xf32>
    %94 = arith.mulf %84, %93 : vector<16x128xf32>
    %c0_67 = arith.constant 0 : index
    %c0_68 = arith.constant 0 : index
    %95 = vector.load %arg9[%c0_67, %c0_68] : memref<1x128xf32, #tpu.memory_space<vmem>>, vector<1x128xf32>
    %96 = vector.broadcast %95 : vector<1x128xf32> to vector<16x128xf32>
    %97 = arith.mulf %94, %96 : vector<16x128xf32>
    %c0_69 = arith.constant 0 : index
    %c0_70 = arith.constant 0 : index
    %98 = vector.load %arg10[%c0_69, %c0_70] : memref<1x128xf32, #tpu.memory_space<vmem>>, vector<1x128xf32>
    %99 = vector.broadcast %98 : vector<1x128xf32> to vector<16x128xf32>
    %100 = arith.addf %97, %99 : vector<16x128xf32>
    %c0_71 = arith.constant 0 : index
    %c0_72 = arith.constant 0 : index
    %101 = vector.load %arg11[%c0_71, %c0_72] : memref<16x128xf32, #tpu.memory_space<vmem>>, vector<16x128xf32>
    tpu.vector_store %arg11[%c0_71, %c0_72], %100 {strides = array<i32>} : memref<16x128xf32, #tpu.memory_space<vmem>>, vector<16x128xf32>,
    return
  }
}

</mosaic_0001>

<bundles_post_ra>
// kernel: tpu_custom_call.1
= control target key start
LH: loop header
LB: loop body
LE: loop exit
PB: predicated region body
PF: predicated region fallthrough
CT: control target
= control target key end

     0   :  { %16 = vsyncpa [#allocation3], 0  ;;  %s1217_s0 = inlined_call_operand.hbm [shape: f32[8,128], index: 0, kind: input, shape index: {}]   ;;  %s1218_s1 = inlined_call_operand.hbm [shape: f32[8,128], index: 1, kind: input, shape index: {}]   ;;  %s1219_s2 = inlined_call_operand.hbm [shape: f32[128,128], index: 2, kind: input, shape index: {}]   ;;  %s1220_s3 = inlined_call_operand.hbm [shape: f32[128,128], index: 3, kind: input, shape index: {}]   ;;  %s1221_s4 = inlined_call_operand.vmem [shape: f32[1,128], index: 4, kind: input, shape index: {}]   ;;  %s1222_s5 = inlined_call_operand.vmem [shape: f32[1,128], index: 5, kind: input, shape index: {}]   ;;  %s1223_s6 = inlined_call_operand.hbm [shape: f32[2,16,16], index: 6, kind: input, shape index: {}]   ;;  %s1224_s7 = inlined_call_operand.hbm [shape: f32[3,128,384], index: 7, kind: input, shape index: {}]   ;;  %s1225_s8 = inlined_call_operand.vmem [shape: f32[3,1,128], index: 8, kind: input, shape index: {}]   ;;  %s1226_s9 = inlined_call_operand.vmem [shape: f32[1,128], index: 9, kind: input, shape index: {}]   ;;  %s1227_s10 = inlined_call_operand.vmem [shape: f32[1,128], index: 10, kind: input, shape index: {}]   ;;  %s1228_s11 = inlined_call_operand.hbm [shape: f32[16,128], index: 11, kind: output, shape index: {}]  }
   0x1   :  { %17 = vsyncpa [#allocation6], 0 }
   0x2   :  { %18 = vsyncpa [#allocation9], 0 }
   0x3   :  { %19 = vsyncpa [#allocation12], 0  ;;  %s37_s19 = sshll.u32 %s1218_s1, 4  ;;  %s38_s19 = int_to_ptr.hbm [resolvable:$true] %s37_s19 }
   0x4   :  { %20 = vsyncpa [#allocation4], 0  ;;  %s1059_s20 = smov [#allocation5]   ;;  %s60_s24 = sshll.u32 %s1220_s3, 4  ;;  %s61_s24 = int_to_ptr.hbm [resolvable:$true] %s60_s24 }
   0x5   :  { %s39_s21 = sshll.u32 %s1059_s20, 4  ;;  %s1060_s25 = smov [#allocation8]   ;;  %s40_s21 = int_to_ptr.vmem [resolvable:$true] %s39_s21 }
   0x6   :  { %42 = dma.hbm_to_vmem [thread:$0]  %s38_s19, 128, %s40_s21, [#allocation6]  }
   0x7   :  { %s62_s26 = sshll.u32 %s1060_s25, 4  ;;  %s26_s29 = sshll.u32 %s1217_s0, 4  ;;  %s63_s26 = int_to_ptr.vmem [resolvable:$true] %s62_s26  ;;  %s27_s29 = int_to_ptr.hbm [resolvable:$true] %s26_s29 }
   0x8   :  { %s1061_s1 = smov 128   ;;  %s1062_s30 = smov 8  }
   0x9   :  { %68 = dma.hbm_to_vmem [thread:$0]  %s61_s24, 2048, %s63_s26, [#allocation9], %s1061_s1, %s1061_s1, %s1062_s30  }
   0xa   :  { %s47_s14 = sshll.u32 %s1219_s2, 4  ;;  %s1063_s3 = smov [#allocation2]   ;;  %s48_s14 = int_to_ptr.hbm [resolvable:$true] %s47_s14 }
   0xb   :  { %s28_s15 = sshll.u32 %s1063_s3, 4  ;;  %s1064_s16 = smov [#allocation7]   ;;  %s29_s15 = int_to_ptr.vmem [resolvable:$true] %s28_s15 }
   0xc   :  { %31 = dma.hbm_to_vmem [thread:$0]  %s27_s29, 128, %s29_s15, [#allocation3]  }
   0xd   :  { %s49_s17 = sshll.u32 %s1064_s16, 4  ;;  %s77_s19 = sshll.u32 %s1223_s6, 4  ;;  %s50_s17 = int_to_ptr.vmem [resolvable:$true] %s49_s17  ;;  %s78_s19 = int_to_ptr.hbm [resolvable:$true] %s77_s19 }
   0xe   :  { %55 = dma.hbm_to_vmem [thread:$0]  %s48_s14, 2048, %s50_s17, [#allocation6], %s1061_s1, %s1061_s1, %s1062_s30  }
   0xf   :  { %s90_s2 = sshll.u32 %s1224_s7, 4  ;;  %s1065_s22 = smov [#allocation10]   ;;  %s91_s2 = int_to_ptr.hbm [resolvable:$true] %s90_s2 }
  0x10   :  { %s79_s23 = sshll.u32 %s1065_s22, 4  ;;  %s1066_s24 = smov [#allocation11]   ;;  %s80_s23 = int_to_ptr.vmem [resolvable:$true] %s79_s23 }
  0x11   :  { %85 = dma.hbm_to_vmem [thread:$0]  %s78_s19, 512, %s80_s23, [#allocation9], %s1061_s1, %s1061_s1, %s1062_s30  }
  0x12   :  { %s92_s6 = sshll.u32 %s1066_s24, 4  ;;  %s1067_s25 = smov 384   ;;  %s93_s6 = int_to_ptr.vmem [resolvable:$true] %s92_s6 }
  0x13   :  { %s1068_s26 = smov 24  }
  0x14   :  { %98 = dma.hbm_to_vmem [thread:$0]  %s91_s2, 18432, %s93_s6, [#allocation12], %s1067_s25, %s1067_s25, %s1068_s26  }
  0x15   :  { %1049 = dma.done.wait [#allocation3], 128  }
  0x16   :  { %1050 = vsyncadd [#allocation3], 4294967168 }
  0x17   :  { %1051 = dma.done.wait [#allocation6], 2176  }
  0x18   :  { %1052 = vsyncadd [#allocation6], 4294965120 }
  0x19   :  { %1053 = dma.done.wait [#allocation9], 2560  }
  0x1a   :  { %1054 = vsyncadd [#allocation9], 4294964736 }
  0x1b   :  { %1055 = dma.done.wait [#allocation12], 18432  }
  0x1c   :  { %1056 = vsyncadd [#allocation12], 4294948864  ;;  %v145_v0 = vld [vmem:[#allocation7 + $0x78] sm:$0xff]  ;;  %v144_v1 = vld [vmem:[#allocation7 + $0x70] sm:$0xff]  ;;  %vm340_vm0 = vcmask 130048   ;;  %s827_s20 = sshll.u32 %s1228_s11, 4  ;;  %s828_s20 = int_to_ptr.hbm [resolvable:$true] %s827_s20 }
  0x1d   :  { %150 = vmatpush.msra.mxu0 %v145_v0  ;;  %v187_v2 = vld [vmem:[#allocation8 + $0x78] sm:$0xff]  ;;  %v143_v3 = vld [vmem:[#allocation7 + $0x68] sm:$0xff]  ;;  %v186_v4 = vld [vmem:[#allocation8 + $0x70] sm:$0xff] }
  0x1e   :  { %192 = vmatpush.msra.mxu1 %v187_v2  ;;  %v185_v5 = vld [vmem:[#allocation8 + $0x68] sm:$0xff]  ;;  %v142_v6 = vld [vmem:[#allocation7 + $0x60] sm:$0xff]  ;;  %v141_v8 = vld [vmem:[#allocation7 + $0x58] sm:$0xff] }
  0x1f   :  { %151 = vmatpush.msra.mxu0 %v144_v1  ;;  %v184_v7 = vld [vmem:[#allocation8 + $0x60] sm:$0xff]  ;;  %v183_v9 = vld [vmem:[#allocation8 + $0x58] sm:$0xff]  ;;  %v140_v10 = vld [vmem:[#allocation7 + $0x50] sm:$0xff] }
  0x20   :  { %193 = vmatpush.msra.mxu1 %v186_v4  ;;  %v182_v11 = vld [vmem:[#allocation8 + $0x50] sm:$0xff]  ;;  %v139_v12 = vld [vmem:[#allocation7 + $0x48] sm:$0xff]  ;;  %v138_v16 = vld [vmem:[#allocation7 + $0x40] sm:$0xff] }
  0x21   :  { %152 = vmatpush.msra.mxu0 %v143_v3  ;;  %v181_v13 = vld [vmem:[#allocation8 + $0x48] sm:$0xff]  ;;  %v261_v15 = vld [vmem:[#allocation11 + $0x170] sm:$0xff]  ;;  %v258_v18 = vld [vmem:[#allocation11 + $0x158] sm:$0xff] }
  0x22   :  { %194 = vmatpush.msra.mxu1 %v185_v5  ;;  %v260_v14 = vld [vmem:[#allocation11 + $0x168] sm:$0xff]  ;;  %v257_v17 = vld [vmem:[#allocation11 + $0x150] sm:$0xff]  ;;  %v180_v19 = vld [vmem:[#allocation8 + $0x40] sm:$0xff]  ;;  %286 = vmatpush.msra.mxu3 %v261_v15 }
  0x23   :  { %153 = vmatpush.msra.mxu0 %v142_v6  ;;  %263 = vmatpush.msra.mxu2 %v260_v14  ;;  %v254_v20 = vld [vmem:[#allocation11 + $0x138] sm:$0xff]  ;;  %v255_v22 = vld [vmem:[#allocation11 + $0x140] sm:$0xff]  ;;  %v136_v25 = vld [vmem:[#allocation7 + $0x30] sm:$0xff] }
  0x24   :  { %195 = vmatpush.msra.mxu1 %v184_v7  ;;  %v137_v21 = vld [vmem:[#allocation7 + $0x38] sm:$0xff]  ;;  %287 = vmatpush.msra.mxu3 %v258_v18  ;;  %v251_v24 = vld [vmem:[#allocation11 + $0x120] sm:$0xff]  ;;  %v252_v26 = vld [vmem:[#allocation11 + $0x128] sm:$0xff] }
  0x25   :  { %154 = vmatpush.msra.mxu0 %v141_v8  ;;  %264 = vmatpush.msra.mxu2 %v257_v17  ;;  %v179_v23 = vld [vmem:[#allocation8 + $0x38] sm:$0xff]  ;;  %v178_v27 = vld [vmem:[#allocation8 + $0x30] sm:$0xff]  ;;  %v248_v28 = vld [vmem:[#allocation11 + $0x108] sm:$0xff] }
  0x26   :  { %196 = vmatpush.msra.mxu1 %v183_v9  ;;  %288 = vmatpush.msra.mxu3 %v255_v22  ;;  %v135_v29 = vld [vmem:[#allocation7 + $0x28] sm:$0xff]  ;;  %v249_v30 = vld [vmem:[#allocation11 + $0x110] sm:$0xff]  ;;  %v134_v31 = vld [vmem:[#allocation7 + $0x20] sm:$0xff] }
  0x27   :  { %155 = vmatpush.msra.mxu0 %v140_v10  ;;  %265 = vmatpush.msra.mxu2 %v254_v20  ;;  %v177_v32 = vld [vmem:[#allocation8 + $0x28] sm:$0xff]  ;;  %v245_v33 = vld [vmem:[#allocation11 + $0xf0] sm:$0xff]  ;;  %v133_v34 = vld [vmem:[#allocation7 + $0x18] sm:$0xff] }
  0x28   :  { %197 = vmatpush.msra.mxu1 %v182_v11  ;;  %289 = vmatpush.msra.mxu3 %v252_v26  ;;  %v176_v35 = vld [vmem:[#allocation8 + $0x20] sm:$0xff]  ;;  %v246_v36 = vld [vmem:[#allocation11 + $0xf8] sm:$0xff]  ;;  %v132_v41 = vld [vmem:[#allocation7 + $0x10] sm:$0xff] }
  0x29   :  { %156 = vmatpush.msra.mxu0 %v139_v12  ;;  %266 = vmatpush.msra.mxu2 %v251_v24  ;;  %v242_v37 = vld [vmem:[#allocation11 + $0xd8] sm:$0xff]  ;;  %v243_v39 = vld [vmem:[#allocation11 + $0xe0] sm:$0xff]  ;;  %v240_v42 = vld [vmem:[#allocation11 + $0xc8] sm:$0xff] }
  0x2a   :  { %198 = vmatpush.msra.mxu1 %v181_v13  ;;  %v175_v38 = vld [vmem:[#allocation8 + $0x18] sm:$0xff]  ;;  %290 = vmatpush.msra.mxu3 %v249_v30  ;;  %v239_v40 = vld [vmem:[#allocation11 + $0xc0] sm:$0xff]  ;;  %v174_v43 = vld [vmem:[#allocation8 + $0x10] sm:$0xff] }
  0x2b   :  { %157 = vmatpush.msra.mxu0 %v138_v16  ;;  %267 = vmatpush.msra.mxu2 %v248_v28  ;;  %v236_v44 = vld [vmem:[#allocation11 + $0xa8] sm:$0xff]  ;;  %v237_v46 = vld [vmem:[#allocation11 + $0xb0] sm:$0xff]  ;;  %v130_v49 = vld [vmem:[#allocation7] sm:$0xff] }
  0x2c   :  { %199 = vmatpush.msra.mxu1 %v180_v19  ;;  %291 = vmatpush.msra.mxu3 %v246_v36  ;;  %v131_v45 = vld [vmem:[#allocation7 + $0x8] sm:$0xff]  ;;  %v233_v48 = vld [vmem:[#allocation11 + $0x90] sm:$0xff]  ;;  %v234_v50 = vld [vmem:[#allocation11 + $0x98] sm:$0xff] }
  0x2d   :  { %158 = vmatpush.msra.mxu0 %v137_v21  ;;  %268 = vmatpush.msra.mxu2 %v245_v33  ;;  %v173_v47 = vld [vmem:[#allocation8 + $0x8] sm:$0xff]  ;;  %v129_v51 = vld [vmem:[#allocation2] sm:$0xff]  ;;  %v172_v52 = vld [vmem:[#allocation8] sm:$0xff] }
  0x2e   :  { %200 = vmatpush.msra.mxu1 %v179_v23  ;;  %292 = vmatpush.msra.mxu3 %v243_v39  ;;  %v171_v53 = vld [vmem:[#allocation5] sm:$0xff]  ;;  %v259_v55 = vld [vmem:[#allocation11 + $0x160] sm:$0xff]  ;;  %v256_v56 = vld [vmem:[#allocation11 + $0x148] sm:$0xff] }
  0x2f   :  { %159 = vmatpush.msra.mxu0 %v136_v25  ;;  %269 = vmatpush.msra.mxu2 %v242_v37  ;;  %v262_v54 = vld [vmem:[#allocation11 + $0x178] sm:$0xff]  ;;  %v253_v57 = vld [vmem:[#allocation11 + $0x130] sm:$0xff]  ;;  %v247_v59 = vld [vmem:[#allocation11 + $0x100] sm:$0xff] }
  0x30   :  { %201 = vmatpush.msra.mxu1 %v178_v27  ;;  %293 = vmatpush.msra.mxu3 %v240_v42  ;;  %v250_v58 = vld [vmem:[#allocation11 + $0x118] sm:$0xff]  ;;  %v244_v60 = vld [vmem:[#allocation11 + $0xe8] sm:$0xff]  ;;  %v241_v61 = vld [vmem:[#allocation11 + $0xd0] sm:$0xff] }
  0x31   :  { %160 = vmatpush.msra.mxu0 %v135_v29  ;;  %270 = vmatpush.msra.mxu2 %v239_v40  ;;  %v238_v62 = vld [vmem:[#allocation11 + $0xb8] sm:$0xff]  ;;  %v235_v63 = vld [vmem:[#allocation11 + $0xa0] sm:$0xff]  ;;  %v232_v2 = vld [vmem:[#allocation11 + $0x88] sm:$0xff] }
  0x32   :  { %202 = vmatpush.msra.mxu1 %v177_v32  ;;  %294 = vmatpush.msra.mxu3 %v237_v46  ;;  %v230_v0 = vld [vmem:[#allocation11 + $0x78] sm:$0xff]  ;;  %v231_v1 = vld [vmem:[#allocation11 + $0x80] sm:$0xff]  ;;  %v228_v4 = vld [vmem:[#allocation11 + $0x68] sm:$0xff] }
  0x33   :  { %161 = vmatpush.msra.mxu0 %v134_v31  ;;  %271 = vmatpush.msra.mxu2 %v236_v44  ;;  %v227_v3 = vld [vmem:[#allocation11 + $0x60] sm:$0xff]  ;;  %v229_v5 = vld [vmem:[#allocation11 + $0x70] sm:$0xff]  ;;  %v224_v6 = vld [vmem:[#allocation11 + $0x48] sm:$0xff] }
  0x34   :  { %203 = vmatpush.msra.mxu1 %v176_v35  ;;  %295 = vmatpush.msra.mxu3 %v234_v50  ;;  %v225_v7 = vld [vmem:[#allocation11 + $0x50] sm:$0xff]  ;;  %v226_v8 = vld [vmem:[#allocation11 + $0x58] sm:$0xff]  ;;  %v223_v11 = vld [vmem:[#allocation11 + $0x40] sm:$0xff] }
  0x35   :  { %162 = vmatpush.msra.mxu0 %v133_v34  ;;  %272 = vmatpush.msra.mxu2 %v233_v48  ;;  %v221_v9 = vld [vmem:[#allocation11 + $0x30] sm:$0xff]  ;;  %v222_v10 = vld [vmem:[#allocation11 + $0x38] sm:$0xff]  ;;  %v219_v13 = vld [vmem:[#allocation11 + $0x20] sm:$0xff] }
  0x36   :  { %204 = vmatpush.msra.mxu1 %v175_v38  ;;  %296 = vmatpush.msra.mxu3 %v231_v1  ;;  %v218_v12 = vld [vmem:[#allocation11 + $0x18] sm:$0xff]  ;;  %v220_v14 = vld [vmem:[#allocation11 + $0x28] sm:$0xff]  ;;  %v215_v15 = vld [vmem:[#allocation11] sm:$0xff] }
  0x37   :  { %163 = vmatpush.msra.mxu0 %v132_v41  ;;  %273 = vmatpush.msra.mxu2 %v230_v0  ;;  %v216_v16 = vld [vmem:[#allocation11 + $0x8] sm:$0xff]  ;;  %v217_v17 = vld [vmem:[#allocation11 + $0x10] sm:$0xff]  ;;  %v448_v26 = vld [vmem:[#allocation11 + $0x2b8] sm:$0xff] }
  0x38   :  { %205 = vmatpush.msra.mxu1 %v174_v43  ;;  %297 = vmatpush.msra.mxu3 %v228_v4  ;;  %v870_v18 = vld [vmem:[%s1221_s4] ss:$0 sm:$0xff]  ;;  %v454_v24 = vld [vmem:[#allocation11 + $0x2e8] sm:$0xff]  ;;  %v445_v27 = vld [vmem:[#allocation11 + $0x2a0] sm:$0xff] }
  0x39   :  { %164 = vmatpush.msra.mxu0 %v131_v45  ;;  %274 = vmatpush.msra.mxu2 %v227_v3  ;;  %v871_v21 = vld [vmem:[%s1222_s5] ss:$0 sm:$0xff]  ;;  %v442_v28 = vld [vmem:[#allocation11 + $0x288] sm:$0xff]  ;;  %v436_v31 = vld [vmem:[#allocation11 + $0x258] sm:$0xff] }
  0x3a   :  { %206 = vmatpush.msra.mxu1 %v173_v47  ;;  %298 = vmatpush.msra.mxu3 %v225_v7  ;;  %v451_v25 = vld [vmem:[#allocation11 + $0x2d0] sm:$0xff]  ;;  %v433_v33 = vld [vmem:[#allocation11 + $0x240] sm:$0xff]  ;;  %v430_v34 = vld [vmem:[#allocation11 + $0x228] sm:$0xff] }
  0x3b   :  { %165 = vmatpush.msra.mxu0 %v130_v49  ;;  %275 = vmatpush.msra.mxu2 %v224_v6  ;;  %v439_v30 = vld [vmem:[#allocation11 + $0x270] sm:$0xff]  ;;  %v456_v38 = vld [vmem:[#allocation11 + $0x2f8] sm:$0xff]  ;;  %v453_v40 = vld [vmem:[#allocation11 + $0x2e0] sm:$0xff] }
  0x3c   :  { %166 = vmatmul.f32.vlgmr.msra.gmra.mxu0 %v129_v51  ;;  %207 = vmatpush.msra.mxu1 %v172_v52  ;;  %v1164_v36 = vld [vmem:[#allocation10 + $0x10] sm:$0xff]  ;;  %v424_v39 = vld [vmem:[#allocation11 + $0x1f8] sm:$0xff]  ;;  %v421_v42 = vld [vmem:[#allocation11 + $0x1e0] sm:$0xff] }
  0x3d   :  { %208 = vmatmul.f32.vlgmr.msra.gmra.mxu1 %v171_v53  ;;  %309 = vmatpush.msrb.mxu0 %v262_v54  ;;  %v427_v37 = vld [vmem:[#allocation11 + $0x210] sm:$0xff]  ;;  %v1168_v43 = vld [vmem:[#allocation10] sm:$0xff]  ;;  %v450_v44 = vld [vmem:[#allocation11 + $0x2c8] sm:$0xff] }
  0x3e   :  { %276 = vmatpush.msra.mxu2 %v221_v9  ;;  %299 = vmatpush.msra.mxu3 %v222_v10  ;;  %v455_v45 = vld [vmem:[#allocation11 + $0x2f0] sm:$0xff]  ;;  %v1172_v47 = vld [vmem:[#allocation10 + $0x18] sm:$0xff]  ;;  %v449_v50 = vld [vmem:[#allocation11 + $0x2c0] sm:$0xff] }
  0x3f   :  { %310 = vmatpush.msrb.mxu0 %v259_v55  ;;  %v447_v46 = vld [vmem:[#allocation11 + $0x2b0] sm:$0xff]  ;;  %v452_v48 = vld [vmem:[#allocation11 + $0x2d8] sm:$0xff]  ;;  %v441_v51 = vld [vmem:[#allocation11 + $0x280] sm:$0xff] }
  0x40   :  { %277 = vmatpush.msra.mxu2 %v218_v12  ;;  %300 = vmatpush.msra.mxu3 %v219_v13  ;;  %v444_v49 = vld [vmem:[#allocation11 + $0x298] sm:$0xff]  ;;  %v446_v52 = vld [vmem:[#allocation11 + $0x2a8] sm:$0xff]  ;;  %v443_v55 = vld [vmem:[#allocation11 + $0x290] sm:$0xff] }
  0x41   :  { %311 = vmatpush.msrb.mxu0 %v256_v56  ;;  %v1176_v53 = vld [vmem:[#allocation10 + $0x8] sm:$0xff]  ;;  %v435_v56 = vld [vmem:[#allocation11 + $0x250] sm:$0xff]  ;;  %v428_v1 = vld [vmem:[#allocation11 + $0x218] sm:$0xff] }
  0x42   :  { %278 = vmatpush.msra.mxu2 %v215_v15  ;;  %301 = vmatpush.msra.mxu3 %v216_v16  ;;  %v438_v54 = vld [vmem:[#allocation11 + $0x268] sm:$0xff]  ;;  %v423_v0 = vld [vmem:[#allocation11 + $0x1f0] sm:$0xff]  ;;  %v420_v6 = vld [vmem:[#allocation11 + $0x1d8] sm:$0xff] }
  0x43   :  { %312 = vmatpush.msrb.mxu0 %v253_v57  ;;  %v440_v57 = vld [vmem:[#allocation11 + $0x278] sm:$0xff]  ;;  %v422_v3 = vld [vmem:[#allocation11 + $0x1e8] sm:$0xff]  ;;  %v415_v7 = vld [vmem:[#allocation11 + $0x1b0] sm:$0xff] }
  0x44   :  { %457 = vmatpush.msrb.mxu3 %v454_v24  ;;  %v418_v4 = vld [vmem:[#allocation11 + $0x1c8] sm:$0xff]  ;;  %v417_v9 = vld [vmem:[#allocation11 + $0x1c0] sm:$0xff]  ;;  %v412_v10 = vld [vmem:[#allocation11 + $0x198] sm:$0xff] }
  0x45   :  { %313 = vmatpush.msrb.mxu0 %v250_v58  ;;  %v432_v58 = vld [vmem:[#allocation11 + $0x238] sm:$0xff]  ;;  %v414_v12 = vld [vmem:[#allocation11 + $0x1a8] sm:$0xff]  ;;  %v409_v13 = vld [vmem:[#allocation11 + $0x180] sm:$0xff] }
  0x46   :  { %458 = vmatpush.msrb.mxu3 %v451_v25  ;;  %v411_v15 = vld [vmem:[#allocation11 + $0x190] sm:$0xff] }
  0x47   :  { %314 = vmatpush.msrb.mxu0 %v247_v59  ;;  %v437_v59 = vld [vmem:[#allocation11 + $0x260] sm:$0xff] }
  0x48   :  { %459 = vmatpush.msrb.mxu3 %v448_v26 }
  0x49   :  { %315 = vmatpush.msrb.mxu0 %v244_v60  ;;  %v429_v60 = vld [vmem:[#allocation11 + $0x220] sm:$0xff] }
  0x4a   :  { %460 = vmatpush.msrb.mxu3 %v445_v27 }
  0x4b   :  { %316 = vmatpush.msrb.mxu0 %v241_v61  ;;  %v434_v61 = vld [vmem:[#allocation11 + $0x248] sm:$0xff] }
  0x4c   :  { %461 = vmatpush.msrb.mxu3 %v442_v28 }
  0x4d   :  { %317 = vmatpush.msrb.mxu0 %v238_v62  ;;  %v426_v62 = vld [vmem:[#allocation11 + $0x208] sm:$0xff] }
  0x4e   :  { %462 = vmatpush.msrb.mxu3 %v439_v30 }
  0x4f   :  { %318 = vmatpush.msrb.mxu0 %v235_v63  ;;  %v431_v63 = vld [vmem:[#allocation11 + $0x230] sm:$0xff] }
  0x50   :  { %463 = vmatpush.msrb.mxu3 %v436_v31  ;;  %v631_v31 = vld [vmem:[#allocation11 + $0x468] sm:$0xff] }
  0x51   :  { %319 = vmatpush.msrb.mxu0 %v232_v2  ;;  %v425_v2 = vld [vmem:[#allocation11 + $0x200] sm:$0xff] }
  0x52   :  { %464 = vmatpush.msrb.mxu3 %v433_v33  ;;  %v628_v33 = vld [vmem:[#allocation11 + $0x450] sm:$0xff] }
  0x53   :  { %320 = vmatpush.msrb.mxu0 %v229_v5  ;;  %v419_v5 = vld [vmem:[#allocation11 + $0x1d0] sm:$0xff] }
  0x54   :  { %465 = vmatpush.msrb.mxu3 %v430_v34  ;;  %v630_v34 = vld [vmem:[#allocation11 + $0x460] sm:$0xff] }
  0x55   :  { %321 = vmatpush.msrb.mxu0 %v226_v8  ;;  %v416_v8 = vld [vmem:[#allocation11 + $0x1b8] sm:$0xff] }
  0x56   :  { %466 = vmatpush.msrb.mxu3 %v427_v37  ;;  %v627_v37 = vld [vmem:[#allocation11 + $0x448] sm:$0xff] }
  0x57   :  { %322 = vmatpush.msrb.mxu0 %v223_v11  ;;  %v413_v11 = vld [vmem:[#allocation11 + $0x1a0] sm:$0xff] }
  0x58   :  { %467 = vmatpush.msrb.mxu3 %v424_v39  ;;  %v624_v39 = vld [vmem:[#allocation11 + $0x430] sm:$0xff] }
  0x59   :  { %323 = vmatpush.msrb.mxu0 %v220_v14  ;;  %v410_v14 = vld [vmem:[#allocation11 + $0x188] sm:$0xff] }
  0x5a   :  { %468 = vmatpush.msrb.mxu3 %v421_v42  ;;  %v621_v42 = vld [vmem:[#allocation11 + $0x418] sm:$0xff] }
  0x5b   :  { %324 = vmatpush.msrb.mxu0 %v217_v17 }
  0x5c   :  { %469 = vmatpush.msrb.mxu3 %v418_v4  ;;  %v606_v4 = vld [vmem:[#allocation11 + $0x3a0] sm:$0xff] }
  0x5e   :  { %470 = vmatpush.msrb.mxu3 %v415_v7  ;;  %v603_v7 = vld [vmem:[#allocation11 + $0x388] sm:$0xff] }
  0x60   :  { %471 = vmatpush.msrb.mxu3 %v412_v10  ;;  %v600_v10 = vld [vmem:[#allocation11 + $0x370] sm:$0xff] }
  0x62   :  { %472 = vmatpush.msrb.mxu3 %v409_v13  ;;  %v597_v13 = vld [vmem:[#allocation11 + $0x358] sm:$0xff] }
  0xb9   :  { %v167_v19 = vpop.f32.mrf.mxu0 }
  0xba   :  { %v168_v20 = vadd.f32 %v870_v18, %v167_v19  ;;  %v209_v22 = vpop.f32.mrf.mxu1  ;;  %v872_v18 = vld [vmem:[%s1225_s8] ss:$0 sm:$0xff] }
  0xbb   :  { %v210_v23 = vadd.f32 %v871_v21, %v209_v22 }
  0xbc   :  { %279 = vmatmul.f32.vlgmr.msra.gmra.mxu2 %v168_v20  ;;  %302 = vmatmul.f32.vlgmr.msra.gmra.mxu3 %v168_v20 }
  0xbd   :  { %325 = vmatmul.f32.vlgmr.msrb.gmra.mxu0 %v168_v20 }
  0xc4   :  { %282 = vmatmul.f32.gmra.mxu2 %v210_v23  ;;  %305 = vmatmul.f32.gmra.mxu3 %v210_v23 }
  0xc5   :  { %328 = vmatmul.f32.gmra.mxu0 %v210_v23 }
 0x13a   :  { %v326_v29 = vpop.f32.mrf.mxu0 }
 0x13f   :  { %v303_v32 = vpop.f32.mrf.mxu3  ;;  %v280_v16 = vpop.f32.mrf.mxu2 }
 0x140   :  { %v336_v19 = vadd.f32 %v872_v18, %v280_v16  ;;  %v594_v16 = vld [vmem:[#allocation11 + $0x340] sm:$0xff] }
 0x142   :  { %v329_v35 = vpop.f32.mrf.mxu0 }
 0x143   :  { %395 = vmatpush.msrb.mxu2 %v329_v35  ;;  %v625_v35 = vld [vmem:[#allocation11 + $0x438] sm:$0xff] }
 0x145   :  { %396 = vmatpush.msrb.mxu2 %v326_v29 }
 0x146   :  { %845 = vmatmul.msk.f32.vlgmr.msrb.gmra.mxu2 %vm340_vm0, %v1164_v36 }
 0x147   :  { %v306_v41 = vpop.f32.mrf.mxu3  ;;  %503 = vmatpush.msra.mxu2 %v456_v38  ;;  %v283_v17 = vpop.f32.mrf.mxu2  ;;  %v622_v38 = vld [vmem:[#allocation11 + $0x420] sm:$0xff] }
 0x148   :  { %361 = vmatpush.msrb.mxu1 %v306_v41  ;;  %v337_v25 = vadd.f32 %v872_v18, %v283_v17  ;;  %v619_v41 = vld [vmem:[#allocation11 + $0x408] sm:$0xff]  ;;  %v589_v17 = vld [vmem:[#allocation11 + $0x318] sm:$0xff]  ;;  %v590_v18 = vld [vmem:[#allocation11 + $0x320] sm:$0xff] }
 0x149   :  { %504 = vmatpush.msra.mxu2 %v453_v40 }
 0x14a   :  { %362 = vmatpush.msrb.mxu1 %v303_v32  ;;  %v633_v32 = vld [vmem:[#allocation11 + $0x478] sm:$0xff] }
 0x14b   :  { %843 = vmatmul.msk.f32.vlgmr.msrb.gmra.mxu1 %vm340_vm0, %v1168_v43  ;;  %505 = vmatpush.msra.mxu2 %v450_v44  ;;  %v616_v44 = vld [vmem:[#allocation11 + $0x3f0] sm:$0xff] }
 0x14c   :  { %480 = vmatpush.msra.mxu1 %v455_v45  ;;  %v618_v45 = vld [vmem:[#allocation11 + $0x400] sm:$0xff] }
 0x14d   :  { %506 = vmatpush.msra.mxu2 %v447_v46  ;;  %v613_v46 = vld [vmem:[#allocation11 + $0x3d8] sm:$0xff] }
 0x14e   :  { %846 = vmatmul.msk.f32.gmra.mxu2 %vm340_vm0, %v1172_v47  ;;  %481 = vmatpush.msra.mxu1 %v452_v48  ;;  %v615_v48 = vld [vmem:[#allocation11 + $0x3e8] sm:$0xff] }
 0x14f   :  { %507 = vmatpush.msra.mxu2 %v444_v49 }
 0x150   :  { %482 = vmatpush.msra.mxu1 %v449_v50 }
 0x151   :  { %508 = vmatpush.msra.mxu2 %v441_v51  ;;  %v632_v51 = vld [vmem:[#allocation11 + $0x470] sm:$0xff] }
 0x152   :  { %483 = vmatpush.msra.mxu1 %v446_v52  ;;  %v629_v52 = vld [vmem:[#allocation11 + $0x458] sm:$0xff] }
 0x153   :  { %844 = vmatmul.msk.f32.gmra.mxu1 %vm340_vm0, %v1176_v53  ;;  %509 = vmatpush.msra.mxu2 %v438_v54  ;;  %v626_v54 = vld [vmem:[#allocation11 + $0x440] sm:$0xff] }
 0x154   :  { %484 = vmatpush.msra.mxu1 %v443_v55 }
 0x155   :  { %510 = vmatpush.msra.mxu2 %v435_v56  ;;  %v623_v56 = vld [vmem:[#allocation11 + $0x428] sm:$0xff] }
 0x156   :  { %485 = vmatpush.msra.mxu1 %v440_v57  ;;  %v620_v57 = vld [vmem:[#allocation11 + $0x410] sm:$0xff] }
 0x157   :  { %511 = vmatpush.msra.mxu2 %v432_v58  ;;  %v617_v58 = vld [vmem:[#allocation11 + $0x3f8] sm:$0xff] }
 0x158   :  { %486 = vmatpush.msra.mxu1 %v437_v59  ;;  %v614_v59 = vld [vmem:[#allocation11 + $0x3e0] sm:$0xff] }
 0x159   :  { %512 = vmatpush.msra.mxu2 %v429_v60  ;;  %v610_v60 = vld [vmem:[#allocation11 + $0x3c0] sm:$0xff] }
 0x15a   :  { %487 = vmatpush.msra.mxu1 %v434_v61  ;;  %v611_v61 = vld [vmem:[#allocation11 + $0x3c8] sm:$0xff] }
 0x15b   :  { %513 = vmatpush.msra.mxu2 %v426_v62  ;;  %v612_v62 = vld [vmem:[#allocation11 + $0x3d0] sm:$0xff] }
 0x15c   :  { %488 = vmatpush.msra.mxu1 %v431_v63  ;;  %v607_v63 = vld [vmem:[#allocation11 + $0x3a8] sm:$0xff] }
 0x15d   :  { %514 = vmatpush.msra.mxu2 %v423_v0  ;;  %v608_v0 = vld [vmem:[#allocation11 + $0x3b0] sm:$0xff] }
 0x15e   :  { %489 = vmatpush.msra.mxu1 %v428_v1  ;;  %v609_v1 = vld [vmem:[#allocation11 + $0x3b8] sm:$0xff] }
 0x15f   :  { %515 = vmatpush.msra.mxu2 %v420_v6  ;;  %v602_v6 = vld [vmem:[#allocation11 + $0x380] sm:$0xff] }
 0x160   :  { %490 = vmatpush.msra.mxu1 %v425_v2  ;;  %v604_v2 = vld [vmem:[#allocation11 + $0x390] sm:$0xff] }
 0x161   :  { %516 = vmatpush.msra.mxu2 %v417_v9  ;;  %v599_v9 = vld [vmem:[#allocation11 + $0x368] sm:$0xff] }
 0x162   :  { %491 = vmatpush.msra.mxu1 %v422_v3  ;;  %v605_v3 = vld [vmem:[#allocation11 + $0x398] sm:$0xff] }
 0x163   :  { %517 = vmatpush.msra.mxu2 %v414_v12  ;;  %v596_v12 = vld [vmem:[#allocation11 + $0x350] sm:$0xff] }
 0x164   :  { %492 = vmatpush.msra.mxu1 %v419_v5  ;;  %v601_v5 = vld [vmem:[#allocation11 + $0x378] sm:$0xff] }
 0x165   :  { %518 = vmatpush.msra.mxu2 %v411_v15  ;;  %v593_v15 = vld [vmem:[#allocation11 + $0x338] sm:$0xff] }
 0x166   :  { %493 = vmatpush.msra.mxu1 %v416_v8  ;;  %v598_v8 = vld [vmem:[#allocation11 + $0x360] sm:$0xff] }
 0x167   :  { %680 = vmatpush.msrb.mxu2 %v633_v32 }
 0x168   :  { %494 = vmatpush.msra.mxu1 %v413_v11  ;;  %v595_v11 = vld [vmem:[#allocation11 + $0x348] sm:$0xff] }
 0x169   :  { %681 = vmatpush.msrb.mxu2 %v630_v34 }
 0x16a   :  { %495 = vmatpush.msra.mxu1 %v410_v14  ;;  %v592_v14 = vld [vmem:[#allocation11 + $0x330] sm:$0xff] }
 0x16b   :  { %682 = vmatpush.msrb.mxu2 %v627_v37 }
 0x16c   :  { %634 = vmatpush.msrb.mxu1 %v631_v31 }
 0x16d   :  { %683 = vmatpush.msrb.mxu2 %v624_v39 }
 0x16e   :  { %635 = vmatpush.msrb.mxu1 %v628_v33 }
 0x16f   :  { %684 = vmatpush.msrb.mxu2 %v621_v42 }
 0x170   :  { %636 = vmatpush.msrb.mxu1 %v625_v35 }
 0x171   :  { %685 = vmatpush.msrb.mxu2 %v618_v45 }
 0x172   :  { %637 = vmatpush.msrb.mxu1 %v622_v38 }
 0x173   :  { %686 = vmatpush.msrb.mxu2 %v615_v48  ;;  %v874_v48 = vld [vmem:[%s1225_s8 + $0x2] ss:$0 sm:$0xff] }
 0x174   :  { %638 = vmatpush.msrb.mxu1 %v619_v41 }
 0x175   :  { %687 = vmatpush.msrb.mxu2 %v612_v62 }
 0x176   :  { %639 = vmatpush.msrb.mxu1 %v616_v44 }
 0x177   :  { %688 = vmatpush.msrb.mxu2 %v609_v1 }
 0x178   :  { %640 = vmatpush.msrb.mxu1 %v613_v46 }
 0x179   :  { %689 = vmatpush.msrb.mxu2 %v606_v4 }
 0x17a   :  { %641 = vmatpush.msrb.mxu1 %v610_v60 }
 0x17b   :  { %690 = vmatpush.msrb.mxu2 %v603_v7 }
 0x17c   :  { %642 = vmatpush.msrb.mxu1 %v607_v63 }
 0x17d   :  { %691 = vmatpush.msrb.mxu2 %v600_v10 }
 0x17e   :  { %643 = vmatpush.msrb.mxu1 %v604_v2 }
 0x17f   :  { %692 = vmatpush.msrb.mxu2 %v597_v13 }
 0x180   :  { %644 = vmatpush.msrb.mxu1 %v601_v5 }
 0x181   :  { %693 = vmatpush.msrb.mxu2 %v594_v16 }
 0x182   :  { %645 = vmatpush.msrb.mxu1 %v598_v8 }
 0x184   :  { %646 = vmatpush.msrb.mxu1 %v595_v11 }
 0x186   :  { %647 = vmatpush.msrb.mxu1 %v592_v14 }
 0x188   :  { %648 = vmatpush.msrb.mxu1 %v589_v17 }
 0x1c8   :  { %v364_v20 = vpop.f32.mrf.mxu1 }
 0x1c9   :  { %v370_v21 = vadd.f32 %v364_v20, %v336_v19  ;;  %v398_v22 = vpop.f32.mrf.mxu2  ;;  %v591_v19 = vld [vmem:[#allocation11 + $0x328] sm:$0xff]  ;;  %v586_v20 = vld [vmem:[#allocation11 + $0x300] sm:$0xff] }
 0x1ca   :  { %694 = vmatpush.msrb.mxu2 %v591_v19  ;;  %649 = vmatpush.msrb.mxu1 %v586_v20  ;;  %v875_v19 = vld [vmem:[%s1226_s9] ss:$0 sm:$0xff]  ;;  %s1070_s9 = smov [#allocation13]  }
 0x1cb   :  { %v404_v23 = vadd.f32 %v398_v22, %v370_v21  ;;  %v587_v21 = vld [vmem:[#allocation11 + $0x308] sm:$0xff]  ;;  %v588_v22 = vld [vmem:[#allocation11 + $0x310] sm:$0xff]  ;;  %s825_s0 = sshll.u32 %s1070_s9, 4  ;;  %s826_s0 = int_to_ptr.vmem [resolvable:$true] %s825_s0 }
 0x1cc   :  { %695 = vmatpush.msrb.mxu2 %v588_v22 }
 0x1cd   :  { %v406_v24 = vmax.f32 %v404_v23, 0.0 }
 0x1cf   :  { %473 = vmatmul.f32.vlgmr.msrb.gmra.mxu3 %v406_v24  ;;  %496 = vmatmul.f32.vlgmr.msra.gmra.mxu1 %v406_v24 }
 0x1d0   :  { %519 = vmatmul.f32.vlgmr.msra.gmra.mxu2 %v406_v24  ;;  %v367_v26 = vpop.f32.mrf.mxu1 }
 0x1d1   :  { %v371_v27 = vadd.f32 %v367_v26, %v337_v25  ;;  %v401_v28 = vpop.f32.mrf.mxu2  ;;  %v873_v25 = vld [vmem:[%s1225_s8 + $0x1] ss:$0 sm:$0xff] }
 0x1d3   :  { %v405_v29 = vadd.f32 %v401_v28, %v371_v27 }
 0x1d5   :  { %v407_v30 = vmax.f32 %v405_v29, 0.0 }
 0x1d7   :  { %476 = vmatmul.f32.gmra.mxu3 %v407_v30  ;;  %499 = vmatmul.f32.gmra.mxu1 %v407_v30 }
 0x1d8   :  { %522 = vmatmul.f32.gmra.mxu2 %v407_v30 }
 0x24c   :  { %v497_v40 = vpop.f32.mrf.mxu1 }
 0x252   :  { %v474_v23 = vpop.f32.mrf.mxu3 }
 0x253   :  { %v520_v49 = vpop.f32.mrf.mxu2  ;;  %v531_v27 = vadd.f32 %v873_v25, %v474_v23  ;;  %v876_v23 = vld [vmem:[%s1227_s10] ss:$0 sm:$0xff] }
 0x254   :  { %v500_v50 = vpop.f32.mrf.mxu1 }
 0x255   :  { %547 = vmatpush.msra.mxu0 %v500_v50 }
 0x257   :  { %548 = vmatpush.msra.mxu0 %v497_v40 }
 0x258   :  { %848 = vmatmul.msk.f32.vlgmr.msra.gmra.mxu0 %vm340_vm0, %v1168_v43 }
 0x259   :  { %657 = vmatpush.msrb.mxu0 %v632_v51 }
 0x25a   :  { %v477_v24 = vpop.f32.mrf.mxu3 }
 0x25b   :  { %v523_v55 = vpop.f32.mrf.mxu2  ;;  %658 = vmatpush.msrb.mxu0 %v629_v52  ;;  %v532_v33 = vadd.f32 %v873_v25, %v477_v24 }
 0x25c   :  { %572 = vmatpush.msra.mxu3 %v523_v55 }
 0x25d   :  { %659 = vmatpush.msrb.mxu0 %v626_v54 }
 0x25e   :  { %573 = vmatpush.msra.mxu3 %v520_v49 }
 0x25f   :  { %850 = vmatmul.msk.f32.vlgmr.msra.gmra.mxu3 %vm340_vm0, %v1164_v36  ;;  %660 = vmatpush.msrb.mxu0 %v623_v56  ;;  %v760_v56 = vlaneseq }
 0x260   :  { %849 = vmatmul.msk.f32.gmra.mxu0 %vm340_vm0, %v1176_v53 }
 0x261   :  { %661 = vmatpush.msrb.mxu0 %v620_v57 }
 0x263   :  { %662 = vmatpush.msrb.mxu0 %v617_v58 }
 0x265   :  { %663 = vmatpush.msrb.mxu0 %v614_v59  ;;  %v1069_v59 = vmov 0.0  }
 0x267   :  { %851 = vmatmul.msk.f32.gmra.mxu3 %vm340_vm0, %v1172_v47  ;;  %664 = vmatpush.msrb.mxu0 %v611_v61 }
 0x269   :  { %665 = vmatpush.msrb.mxu0 %v608_v0 }
 0x26b   :  { %666 = vmatpush.msrb.mxu0 %v605_v3 }
 0x26d   :  { %667 = vmatpush.msrb.mxu0 %v602_v6 }
 0x26f   :  { %668 = vmatpush.msrb.mxu0 %v599_v9 }
 0x271   :  { %669 = vmatpush.msrb.mxu0 %v596_v12 }
 0x273   :  { %670 = vmatpush.msrb.mxu0 %v593_v15 }
 0x275   :  { %671 = vmatpush.msrb.mxu0 %v590_v18 }
 0x277   :  { %672 = vmatpush.msrb.mxu0 %v587_v21 }
 0x2d5   :  { %v550_v26 = vpop.f32.mrf.mxu0 }
 0x2d6   :  { %v556_v28 = vadd.f32 %v550_v26, %v531_v27 }
 0x2dd   :  { %v553_v32 = vpop.f32.mrf.mxu0 }
 0x2de   :  { %v557_v34 = vadd.f32 %v553_v32, %v532_v33 }
 0x2e2   :  { %v575_v29 = vpop.f32.mrf.mxu3 }
 0x2e3   :  { %v581_v30 = vadd.f32 %v575_v29, %v556_v28 }
 0x2e5   :  { %v583_v31 = vmax.f32 %v581_v30, 0.0 }
 0x2e7   :  { %650 = vmatmul.f32.vlgmr.msrb.gmra.mxu1 %v583_v31  ;;  %673 = vmatmul.f32.vlgmr.msrb.gmra.mxu0 %v583_v31 }
 0x2e8   :  { %696 = vmatmul.f32.vlgmr.msrb.gmra.mxu2 %v583_v31 }
 0x2ea   :  { %v578_v35 = vpop.f32.mrf.mxu3 }
 0x2eb   :  { %v582_v37 = vadd.f32 %v578_v35, %v557_v34 }
 0x2ed   :  { %v584_v38 = vmax.f32 %v582_v37, 0.0 }
 0x2ef   :  { %653 = vmatmul.f32.gmra.mxu1 %v584_v38  ;;  %676 = vmatmul.f32.gmra.mxu0 %v584_v38 }
 0x2f0   :  { %699 = vmatmul.f32.gmra.mxu2 %v584_v38 }
 0x364   :  { %v674_v39 = vpop.f32.mrf.mxu0  ;;  %v651_v45 = vpop.f32.mrf.mxu1 }
 0x36b   :  { %v697_v40 = vpop.f32.mrf.mxu2 }
 0x36c   :  { %v677_v41 = vpop.f32.mrf.mxu0  ;;  %v654_v52 = vpop.f32.mrf.mxu1 }
 0x36d   :  { %724 = vmatpush.msrb.mxu3 %v677_v41 }
 0x36f   :  { %725 = vmatpush.msrb.mxu3 %v674_v39 }
 0x370   :  { %853 = vmatmul.msk.f32.vlgmr.msrb.gmra.mxu3 %vm340_vm0, %v1168_v43  ;;  %v708_v43 = vadd.f32 %v874_v48, %v651_v45 }
 0x373   :  { %v700_v42 = vpop.f32.mrf.mxu2 }
 0x374   :  { %749 = vmatpush.msra.mxu3 %v700_v42 }
 0x376   :  { %750 = vmatpush.msra.mxu3 %v697_v40 }
 0x378   :  { %854 = vmatmul.msk.f32.gmra.mxu3 %vm340_vm0, %v1176_v53  ;;  %v709_v53 = vadd.f32 %v874_v48, %v654_v52 }
 0x380   :  { %855 = vmatmul.msk.f32.vlgmr.msra.gmra.mxu3 %vm340_vm0, %v1164_v36 }
 0x388   :  { %856 = vmatmul.msk.f32.gmra.mxu3 %vm340_vm0, %v1172_v47  ;;  %v761_v47 = vand.u32 127, %v760_v56 }
 0x38a   :  { %vm762_vm1 = vcmp.lt.s32.totalorder %v761_v47, 32 }
 0x38b   :  { %v857_v60 = vsel %vm762_vm1, 1.0, %v1069_v59 }
 0x3f3   :  { %v727_v44 = vpop.f32.mrf.mxu3 }
 0x3f4   :  { %v733_v49 = vadd.f32 %v727_v44, %v708_v43 }
 0x3fb   :  { %v730_v46 = vpop.f32.mrf.mxu3 }
 0x3fc   :  { %v734_v54 = vadd.f32 %v730_v46, %v709_v53 }
 0x403   :  { %v752_v50 = vpop.f32.mrf.mxu3 }
 0x404   :  { %v758_v51 = vadd.f32 %v752_v50, %v733_v49 }
 0x406   :  { %765 = vadd.xlane.f32.xlu0 %v758_v51 }
 0x40b   :  { %v755_v55 = vpop.f32.mrf.mxu3 }
 0x40c   :  { %v759_v36 = vadd.f32 %v755_v55, %v734_v54 }
 0x40e   :  { %767 = vadd.xlane.f32.xlu0 %v759_v36 }
 0x479   :  { %v766_v57 = vpop.xlane.xlu0 %765 }
 0x47a   :  { %v769_v58 = vmul.f32 0.03125, %v766_v57 }
 0x47c   :  { %v771_v61 = vsub.f32 %v758_v51, %v769_v58 }
 0x47e   :  { %v773_v62 = vmul.f32 %v857_v60, %v771_v61 }
 0x480   :  { %v775_v63 = vmul.f32 %v773_v62, %v773_v62 }
 0x481   :  { %v768_v0 = vpop.xlane.xlu0 %767 }
 0x482   :  { %v770_v1 = vmul.f32 0.03125, %v768_v0  ;;  %777 = vadd.xlane.f32.xlu1 %v775_v63 }
 0x484   :  { %v772_v2 = vsub.f32 %v759_v36, %v770_v1 }
 0x486   :  { %v774_v3 = vmul.f32 %v857_v60, %v772_v2 }
 0x488   :  { %v776_v4 = vmul.f32 %v774_v3, %v774_v3 }
 0x48a   :  { %779 = vadd.xlane.f32.xlu1 %v776_v4 }
 0x4f5   :  { %v778_v5 = vpop.xlane.xlu1 %777 }
 0x4f6   :  { %v781_v6 = vmul.f32 0.03125, %v778_v5 }
 0x4f8   :  { %v783_v7 = vadd.f32 1e-05, %v781_v6 }
 0x4fa   :  { %877 = vrsqrt.f32 %v783_v7  ;;  %vm791_vm3 = vweird.f32 %v783_v7 }
 0x4fd   :  { %v780_v8 = vpop.xlane.xlu1 %779 }
 0x4fe   :  { %v782_v9 = vmul.f32 0.03125, %v780_v8 }
 0x500   :  { %v878_v10 = vpop.eup %877  ;;  %v784_v11 = vadd.f32 1e-05, %v782_v9 }
 0x501   :  { %v786_v12 = vmul.f32 %v878_v10, %v783_v7  ;;  %vm792_vm2 = vweird.f32 %v878_v10 }
 0x502   :  { %879 = vrsqrt.f32 %v784_v11  ;;  %vm793_vm4 = vmor %vm791_vm3, %vm792_vm2  ;;  %vm801_vm6 = vweird.f32 %v784_v11 }
 0x503   :  { %v787_v13 = vmul.f32 %v878_v10, %v786_v12 }
 0x505   :  { %v788_v14 = vmul.f32 0.5, %v787_v13 }
 0x507   :  { %v789_v15 = vsub.f32 1.5, %v788_v14 }
 0x508   :  { %v880_v16 = vpop.eup %879 }
 0x509   :  { %v790_v17 = vmul.f32 %v878_v10, %v789_v15  ;;  %v796_v18 = vmul.f32 %v880_v16, %v784_v11  ;;  %vm802_vm5 = vweird.f32 %v880_v16 }
 0x50a   :  { %vm803_vm7 = vmor %vm801_vm6, %vm802_vm5 }
 0x50b   :  { %v794_v20 = vsel %vm793_vm4, %v878_v10, %v790_v17  ;;  %v797_v21 = vmul.f32 %v880_v16, %v796_v18 }
 0x50c   :  { %v805_v22 = vmul.f32 %v794_v20, %v773_v62 }
 0x50d   :  { %v798_v24 = vmul.f32 0.5, %v797_v21 }
 0x50e   :  { %v811_v25 = vmul.f32 %v875_v19, %v805_v22 }
 0x50f   :  { %v799_v26 = vsub.f32 1.5, %v798_v24 }
 0x510   :  { %v817_v27 = vadd.f32 %v876_v23, %v811_v25 }
 0x511   :  { %v800_v28 = vmul.f32 %v880_v16, %v799_v26 }
 0x512   :  { %819 = vst [vmem:[#allocation13] sm:$0xff] %v817_v27 }
 0x513   :  { %v804_v29 = vsel %vm803_vm7, %v880_v16, %v800_v28 }
 0x514   :  { %v806_v30 = vmul.f32 %v804_v29, %v774_v3 }
 0x516   :  { %v812_v31 = vmul.f32 %v875_v19, %v806_v30 }
 0x518   :  { %v818_v32 = vadd.f32 %v876_v23, %v812_v31 }
 0x51a   :  { %820 = vst [vmem:[#allocation13 + $0x8] sm:$0xff] %v818_v32 }
 0x51b   :  { %833 = dma.vmem_to_hbm [thread:$0]  %s826_s0, 256, %s828_s20, [#allocation4], %s1061_s1, %s1061_s1, %s1062_s30  }
 0x51c   :  { %1057 = dma.done.wait [#allocation4], 256  }
 0x51d   :  { %1058 = vsyncadd [#allocation4], 4294967040 }
 0x51e   :  { %838 = vsyncpa [#allocation3], 1 }
 0x51f   :  { %839 = vsyncpa [#allocation6], 1 }
 0x520   :  { %840 = vsyncpa [#allocation9], 1 }
 0x521   :  { %841 = vsyncpa [#allocation12], 1 }
 0x522   :  { %842 = vsyncpa [#allocation4], 1 }

</bundles_post_ra>
